<compile_context>
chip_gen: v6e
topology: v6e:2x2x1
jax: 0.10.0
libtpu: 0.0.40
codegen_flags: <defaults>
</compile_context>

<pallas_src>
import jax
import jax.numpy as jnp
from jax import lax
from jax.experimental import pallas as pl
from jax.experimental.pallas import tpu as pltpu


def _round_up(a, b):
    return -(-a // b) * b


def _make_elbo_sum_kernel(r, tile_p, lw):
    """Per-tile sum of target-selected log-probs into a resident (1, 8, lw) f32 block."""

    def kernel(x_ref, t_ref, out_ref):
        si = pl.program_id(1)

        @pl.when(si == 0)
        def _init():
            out_ref[...] = jnp.zeros_like(out_ref)

        x = x_ref[...].astype(jnp.float32)          # (tile_p, lw) packed log-probs
        t = t_ref[...]                              # (tile_p, r) lane targets, -1 = padding
        col = lax.broadcasted_iota(jnp.int32, x.shape, 1)

        # One-hot gather via compare/select: padded rows (-1 targets), garbage lanes of
        # ragged last blocks and phantom megacore blocks never match, and -inf/NaN in
        # unselected lanes never propagate (select, not multiply).
        m = col == t[:, 0:1]
        for k in range(1, r):
            m = jnp.logical_or(m, col == t[:, k:k + 1])
        picked = jnp.where(m, x, jnp.float32(0.0))

        # Per-vreg partial sums only (pure VPU adds, free contiguous reshape); the single
        # cross-lane/sublane reduce happens in the wrapper on the tiny partial output.
        out_ref[...] += jnp.sum(picked.reshape(tile_p // 8, 8, lw), axis=0)[None]

    return kernel


def elbo_pallas(inp, target, kl, train_size, kl_weight=1.0, *,
                vmem_budget_bytes=8 * 1024 * 1024, max_packed_tile_rows=None):
    """ELBO forward: F.nll_loss(input, target, size_average=True)*train_size + kl_weight*kl."""
    n, c = inp.shape
    if inp.dtype not in (jnp.float32, jnp.bfloat16):
        inp = inp.astype(jnp.float32)       # keep bf16 loads (cast in-kernel), f32 otherwise
    target = target.astype(jnp.int32)
    itemsize = inp.dtype.itemsize

    # ---- lane-dense packing: fold r rows of width c into one 128-lane row ----
    if c < 128 and 128 % c == 0 and (128 // c) <= 32:
        r = 128 // c
    else:
        r = 1                               # block last dim == full C is always legal
    lw = r * c

    # Pad the input only when the packing reshape requires it (at most r-1 rows).
    if n % r != 0:
        inp = jnp.pad(inp, ((0, r - n % r), (0, 0)))
    n_pack = inp.shape[0] // r
    x_packed = inp.reshape(n_pack, lw)      # contiguous -> free

    # ---- tile size: largest block fitting the VMEM budget ----
    lw_pad = _round_up(lw, 128)
    # double-buffered x block + double-buffered target block (lane-padded to 128 lanes)
    bytes_per_row = 2 * (lw_pad * itemsize + 128 * 4)
    tile_p = max(8, vmem_budget_bytes // bytes_per_row)
    if max_packed_tile_rows is not None:
        tile_p = min(tile_p, max_packed_tile_rows)
    tile_p = min(tile_p, _round_up(n_pack, 8))
    tile_p = max(8, (tile_p // 8) * 8)

    total_steps = -(-n_pack // tile_p)
    n_cores = 2 if total_steps >= 2 else 1              # megacore split (helps v7x only)
    steps_per_core = -(-total_steps // n_cores)
    grid = (n_cores, steps_per_core)

    # ---- targets: pad (cheap int32) to the full grid extent with -1 sentinels ----
    n_t_rows = n_cores * steps_per_core * tile_p
    if n_t_rows * r > n:
        target = jnp.pad(target, (0, n_t_rows * r - n), constant_values=-1)
    t2 = target.reshape(n_t_rows, r)
    offs = (jnp.arange(r, dtype=jnp.int32) * c)[None, :]
    t_lane = jnp.where(t2 >= 0, t2 + offs, jnp.int32(-1))

    last_block = total_steps - 1

    def x_index_map(ci, si):
        # Phantom steps (odd step counts) re-read the last real block; their target
        # block is all -1 so they contribute exactly zero.
        return (jnp.minimum(ci * steps_per_core + si, last_block), 0)

    def t_index_map(ci, si):
        return (ci * steps_per_core + si, 0)

    def o_index_map(ci, si):
        return (ci, 0, 0)

    # Explicit VMEM limit: I/O buffers + headroom for in-kernel temporaries; the v5e
    # scoped default (16 MiB) is too small for the enlarged tiles.
    vmem_limit = int(min(max(tile_p * bytes_per_row * 2 + (4 << 20), 16 << 20), 48 << 20))

    kernel = _make_elbo_sum_kernel(r, tile_p, lw)
    partials = pl.pallas_call(
        kernel,
        out_shape=jax.ShapeDtypeStruct((n_cores, 8, lw), jnp.float32),
        grid=grid,
        in_specs=[
            pl.BlockSpec((tile_p, lw), x_index_map),   # packed log-prob tile (VMEM)
            pl.BlockSpec((tile_p, r), t_index_map),    # lane-offset target tile (VMEM)
        ],
        out_specs=pl.BlockSpec((1, 8, lw), o_index_map),   # per-core resident partials
        compiler_params=pltpu.CompilerParams(
            dimension_semantics=("parallel", "arbitrary"),
            vmem_limit_bytes=vmem_limit,
        ),
    )(x_packed, t_lane)

    # Tiny scalar epilogue in the wrapper (per review): combine per-core partials,
    # take the mean over the true N, scale and add the KL term.
    picked_sum = jnp.sum(partials)
    nll = -picked_sum / jnp.float32(n)
    return nll * jnp.float32(train_size) + jnp.float32(kl_weight) * jnp.asarray(kl, jnp.float32)


def elbo_reference(inp, target, kl, train_size, kl_weight=1.0):
    picked = jnp.take_along_axis(inp.astype(jnp.float32),
                                 target[:, None].astype(jnp.int32), axis=1)[:, 0]
    return (-jnp.mean(picked)) * train_size + kl_weight * kl


if __name__ == "__main__":
    key = jax.random.PRNGKey(0)
    k1, k2, k3, k4, k5, k6, k7 = jax.random.split(key, 7)

    train_size = 100.0
    kl_weight = 1.0
    kl = jax.random.uniform(k3, (), dtype=jnp.float32) * 5.0

    # Case 1: small single-tile (N=8, C=32 -> r=4 lane packing).
    N, C = 8, 32
    log_probs = jax.nn.log_softmax(jax.random.normal(k1, (N, C), dtype=jnp.float32), axis=-1)
    target = jax.random.randint(k2, (N,), 0, C, dtype=jnp.int32)
    out = jax.block_until_ready(elbo_pallas(log_probs, target, kl, train_size, kl_weight))
    ref = elbo_reference(log_probs, target, kl, train_size, kl_weight)
    assert jnp.allclose(out, ref, rtol=1e-5, atol=1e-5), (out, ref)

    # Case 2: multi-step grid with an ODD step count -> exercises the 2-core parallel
    # axis, the clamped phantom block, -1 padded targets and ragged last-tile reads.
    N2, C2 = 90, 32                      # n_pack = 23, tile_p = 8 -> 3 steps, 2 "cores"
    lp2 = jax.nn.log_softmax(jax.random.normal(k4, (N2, C2), dtype=jnp.float32), axis=-1)
    t2 = jax.random.randint(k5, (N2,), 0, C2, dtype=jnp.int32)
    out2 = jax.block_until_ready(
        elbo_pallas(lp2, t2, kl, train_size, kl_weight, max_packed_tile_rows=8))
    ref2 = elbo_reference(lp2, t2, kl, train_size, kl_weight)
    assert jnp.allclose(out2, ref2, rtol=1e-5, atol=1e-5), (out2, ref2)

    # Case 3: N not divisible by the packing factor (tiny input pad) + bf16 log-probs.
    N3, C3 = 13, 16                      # r = 8, 13 % 8 != 0
    lp3 = jax.nn.log_softmax(jax.random.normal(k6, (N3, C3), dtype=jnp.float32),
                             axis=-1).astype(jnp.bfloat16)
    t3 = jax.random.randint(k7, (N3,), 0, C3, dtype=jnp.int32)
    out3 = jax.block_until_ready(elbo_pallas(lp3, t3, kl, train_size, kl_weight))
    ref3 = elbo_reference(lp3.astype(jnp.float32), t3, kl, train_size, kl_weight)
    assert jnp.allclose(out3, ref3, rtol=1e-4, atol=1e-3), (out3, ref3)

    print("KERNEL_OK")
</pallas_src>

<mosaic_0001>
module attributes {stable_mosaic.version = 11 : i64} {
  func.func @kernel(%arg0: i32, %arg1: i32, %arg2: memref<8x128xf32, #tpu.memory_space<vmem>>, %arg3: memref<8x4xi32, #tpu.memory_space<vmem>>, %arg4: memref<1x8x128xf32, #tpu.memory_space<vmem>>) attributes {dimension_semantics = [#tpu.dimension_semantics<parallel>, #tpu.dimension_semantics<arbitrary>], iteration_bounds = array<i64: 1, 1>, scalar_prefetch = 0 : i64, scratch_operands = 0 : i64, tpu.core_type = #tpu.core_type<tc>, window_params = [{transform_indices = @transform_0, window_bounds = array<i64: 8, 128>}, {transform_indices = @transform_1, window_bounds = array<i64: 8, 4>}, {transform_indices = @transform_2, window_bounds = array<i64: 1, 8, 128>}]} {
    %c0_i32 = arith.constant 0 : i32
    %0 = arith.cmpi eq, %arg1, %c0_i32 : i32
    %1 = arith.extui %0 : i1 to i32
    %c0_i32_0 = arith.constant 0 : i32
    %2 = arith.cmpi ne, %1, %c0_i32_0 : i32
    scf.if %2 {
      %cst_11 = arith.constant 0.000000e+00 : f32
      %29 = vector.broadcast %cst_11 : f32 to vector<1x8x128xf32>
      %c0_12 = arith.constant 0 : index
      %c0_13 = arith.constant 0 : index
      %c0_14 = arith.constant 0 : index
      %30 = vector.load %arg4[%c0_12, %c0_13, %c0_14] : memref<1x8x128xf32, #tpu.memory_space<vmem>>, vector<1x8x128xf32>
      tpu.vector_store %arg4[%c0_12, %c0_13, %c0_14], %29 {strides = array<i32>} : memref<1x8x128xf32, #tpu.memory_space<vmem>>, vector<1x8x128xf32>,
    } else {
    }
    %c0 = arith.constant 0 : index
    %c0_1 = arith.constant 0 : index
    %3 = vector.load %arg2[%c0, %c0_1] : memref<8x128xf32, #tpu.memory_space<vmem>>, vector<8x128xf32>
    %c0_2 = arith.constant 0 : index
    %c0_3 = arith.constant 0 : index
    %4 = vector.load %arg3[%c0_2, %c0_3] : memref<8x4xi32, #tpu.memory_space<vmem>>, vector<8x4xi32>
    %5 = tpu.iota {dimensions = array<i32: 1>} : vector<8x128xi32>
    %6 = vector.extract_strided_slice %4 {offsets = [0, 0], sizes = [8, 1], strides = [1, 1]} : vector<8x4xi32> to vector<8x1xi32>
    %7 = vector.broadcast %6 : vector<8x1xi32> to vector<8x128xi32>
    %8 = arith.cmpi eq, %5, %7 : vector<8x128xi32>
    %9 = vector.extract_strided_slice %4 {offsets = [0, 1], sizes = [8, 1], strides = [1, 1]} : vector<8x4xi32> to vector<8x1xi32>
    %10 = vector.broadcast %9 : vector<8x1xi32> to vector<8x128xi32>
    %11 = arith.cmpi eq, %5, %10 : vector<8x128xi32>
    %12 = arith.ori %8, %11 : vector<8x128xi1>
    %13 = vector.extract_strided_slice %4 {offsets = [0, 2], sizes = [8, 1], strides = [1, 1]} : vector<8x4xi32> to vector<8x1xi32>
    %14 = vector.broadcast %13 : vector<8x1xi32> to vector<8x128xi32>
    %15 = arith.cmpi eq, %5, %14 : vector<8x128xi32>
    %16 = arith.ori %12, %15 : vector<8x128xi1>
    %17 = vector.extract_strided_slice %4 {offsets = [0, 3], sizes = [8, 1], strides = [1, 1]} : vector<8x4xi32> to vector<8x1xi32>
    %18 = vector.broadcast %17 : vector<8x1xi32> to vector<8x128xi32>
    %19 = arith.cmpi eq, %5, %18 : vector<8x128xi32>
    %20 = arith.ori %16, %19 : vector<8x128xi1>
    %cst = arith.constant 0.000000e+00 : f32
    %21 = vector.broadcast %cst : f32 to vector<8x128xf32>
    %22 = arith.select %20, %3, %21 : vector<8x128xi1>, vector<8x128xf32>
    %c0_4 = arith.constant 0 : index
    %c0_5 = arith.constant 0 : index
    %c0_6 = arith.constant 0 : index
    %23 = vector.load %arg4[%c0_4, %c0_5, %c0_6] : memref<1x8x128xf32, #tpu.memory_space<vmem>>, vector<1x8x128xf32>
    %24 = vector.shape_cast %22 : vector<8x128xf32> to vector<1x8x128xf32>
    %cst_7 = arith.constant dense<0.000000e+00> : vector<8x128xf32>
    %25 = vector.multi_reduction <add>, %24, %cst_7 [0] : vector<1x8x128xf32> to vector<8x128xf32>
    %26 = vector.shape_cast %25 : vector<8x128xf32> to vector<1x8x128xf32>
    %27 = arith.addf %23, %26 : vector<1x8x128xf32>
    %c0_8 = arith.constant 0 : index
    %c0_9 = arith.constant 0 : index
    %c0_10 = arith.constant 0 : index
    %28 = vector.load %arg4[%c0_8, %c0_9, %c0_10] : memref<1x8x128xf32, #tpu.memory_space<vmem>>, vector<1x8x128xf32>
    tpu.vector_store %arg4[%c0_8, %c0_9, %c0_10], %27 {strides = array<i32>} : memref<1x8x128xf32, #tpu.memory_space<vmem>>, vector<1x8x128xf32>,
    return
  }
  func.func @transform_0(%arg0: i32, %arg1: i32) -> (i32, i32) {
    %c1_i32 = arith.constant 1 : i32
    %0 = arith.muli %arg0, %c1_i32 : i32
    %1 = arith.addi %0, %arg1 : i32
    %c0_i32 = arith.constant 0 : i32
    %2 = arith.minsi %1, %c0_i32 : i32
    %c0_i32_0 = arith.constant 0 : i32
    %c0_i32_1 = arith.constant 0 : i32
    return %2, %c0_i32_0 : i32, i32
  }
  func.func @transform_1(%arg0: i32, %arg1: i32) -> (i32, i32) {
    %c1_i32 = arith.constant 1 : i32
    %0 = arith.muli %arg0, %c1_i32 : i32
    %1 = arith.addi %0, %arg1 : i32
    %c0_i32 = arith.constant 0 : i32
    %c0_i32_0 = arith.constant 0 : i32
    return %1, %c0_i32 : i32, i32
  }
  func.func @transform_2(%arg0: i32, %arg1: i32) -> (i32, i32, i32) {
    %c0_i32 = arith.constant 0 : i32
    %c0_i32_0 = arith.constant 0 : i32
    %c0_i32_1 = arith.constant 0 : i32
    return %arg0, %c0_i32, %c0_i32_0 : i32, i32, i32
  }
}

</mosaic_0001>

<bundles_post_ra>
// kernel: tpu_custom_call.1
= control target key start
LH: loop header
LB: loop body
LE: loop exit
PB: predicated region body
PF: predicated region fallthrough
CT: control target
= control target key end

     0   :  { %v163_v1 = vmov 0   ;;  %v164_v2 = vmov 2   ;;  %s192_s0 = inlined_call_operand.vmem [shape: f32[2,128], index: 0, kind: input, shape index: {}]   ;;  %s193_s1 = inlined_call_operand.vmem [shape: s32[8,4], index: 1, kind: input, shape index: {}]   ;;  %s194_s2 = inlined_call_operand.hbm [shape: f32[1,8,128], index: 2, kind: output, shape index: {}]  }
   0x1   :  { %v77_v0 = vld [vmem:[%s193_s1] sm:$0xff]  ;;  %136 = vset.pattern.permute.xlu0 %v163_v1  ;;  %138 = vset.pattern.permute.xlu1 %v164_v2 }
   0x2   :  { %7 = vsyncpa [#allocation3], 0  ;;  %81 = vperm.xlu0 %136, %v77_v0   ;;  %90 = vperm.xlu1 %138, %v77_v0   ;;  %v165_v3 = vmov 1   ;;  %v166_v4 = vmov 3   ;;  %v78_v5 = vlaneseq  ;;  %v76_v11 = vld [vmem:[%s192_s0] sm:$0xff]  ;;  %s167_s12 = smov [#allocation2]  }
   0x3   :  { %s110_s13 = sshll.u32 %s167_s12, 4  ;;  %s111_s13 = int_to_ptr.vmem [resolvable:$true] %s110_s13 }
   0x4   :  { %v79_v8 = vand.u32 127, %v78_v5  ;;  %s141_s14 = scalar_lea.vmem %s111_s13, 128  ;;  %p146_p1 = scmp.lt.s32.totalorder %s111_s13, %s111_s13 }
   0x5   :  { %p142_p0 = scmp.ne.s32.totalorder %s111_s13, %s141_s14  ;;  %p147_p2 = scmp.lt.s32.totalorder %s141_s14, %s141_s14 }
   0x6   :  { %137 = vset.pattern.permute.xlu0 %v165_v3  ;;  %139 = vset.pattern.permute.xlu1 %v166_v4 }
   0x7   :  { %85 = vperm.xlu0 %137, %v77_v0   ;;  %95 = vperm.xlu1 %139, %v77_v0   ;;  %p148_p3 = por %p147_p2, %p146_p1 }
   0x9   :  { %p149_p4 = pnand %p148_p3, %p142_p0 }
   0xb   :  { %140 = vset.pattern.permute.xlu0 %v166_v4 }
  0x7d   :  { %v82_v6 = vpop.permute.xlu0 %81  ;;  %v91_v7 = vpop.permute.xlu1 %90 }
  0x7e   :  { %vm83_vm0 = vcmp.eq.s32.totalorder %v79_v8, %v82_v6  ;;  %vm92_vm3 = vcmp.eq.s32.totalorder %v79_v8, %v91_v7 }
  0x82   :  { %v86_v9 = vpop.permute.xlu0 %85  ;;  %v96_v10 = vpop.permute.xlu1 %95 }
  0x83   :  { %vm87_vm1 = vcmp.eq.s32.totalorder %v79_v8, %v86_v9  ;;  %vm97_vm2 = vcmp.eq.s32.totalorder %v79_v8, %v96_v10 }
  0x84   :  { %vm88_vm4 = vmor %vm83_vm0, %vm87_vm1 }
  0x85   :  { %vm93_vm5 = vmor %vm88_vm4, %vm92_vm3 }
  0x86   :  { %vm98_vm6 = vmor %vm93_vm5, %vm97_vm2 }
  0x87   :  { %v99_v12 = vsel %vm98_vm6, %v76_v11, 0.0 }
  0x88   :  { %103 = vst [vmem:[#allocation2] sm:$0xff] %v99_v12 }
  0x89   :  { %152 = shalt.err (!%p149_p4)
}
  0x8a   :  { %113 = dma.vmem_to_hbm [thread:$0]  %s111_s13, 128, %s194_s2, [#allocation3]  }
  0x8b   :  { %161 = dma.done.wait [#allocation3], 128  }
  0x8c   :  { %162 = vsyncadd [#allocation3], 4294967168 }
  0x8d   :  { %117 = vsyncpa [#allocation3], 1 }

</bundles_post_ra>
